<compile_context>
chip_gen: v6e
topology: v6e:2x2x1
jax: 0.10.0
libtpu: 0.0.40
codegen_flags: <defaults>
</compile_context>

<pallas_src>
import functools

import jax
import jax.numpy as jnp
from jax.experimental import pallas as pl
from jax.experimental.pallas import tpu as pltpu

LANE = 128
SUBLANE = 8


def _round_up(x, m):
    return ((x + m - 1) // m) * m


def hidden_block_kernel(x_ref, w1_ref, b1_ref, w2_ref, b2_ref, o_ref):
    # Cast x to the compute dtype (bf16) inside the kernel: x is read from HBM
    # exactly once, in its original dtype.
    x = x_ref[...].astype(w1_ref.dtype)
    # fc1 (MXU, f32 accumulate) + bias + ReLU in f32.
    h = jnp.dot(x, w1_ref[...], preferred_element_type=jnp.float32)
    h = jnp.maximum(h + b1_ref[...], 0.0)
    # fc2 (cast activation back to bf16 for the MXU) + bias + ReLU.
    y = jnp.dot(h.astype(w2_ref.dtype), w2_ref[...],
                preferred_element_type=jnp.float32)
    o_ref[...] = jnp.maximum(y + b2_ref[...], 0.0).astype(o_ref.dtype)


def prepare_hidden_block_params(w1, b1, w2, b2, *, compute_dtype=jnp.bfloat16):
    """One-time parameter prep (hoisted out of the forward path).

    PyTorch Linear layout: w1 [P, K], b1 [P], w2 [P, P], b2 [P].
    Returns:
      w1t [K,  Pp] bf16  (hidden dim zero-padded to a lane multiple)
      b1r [1,  Pp] f32
      w2t [Pp, P ] bf16  (output dim kept at its true width P)
      b2r [1,  P ] f32
    Zero-padded hidden lanes stay exactly 0 through bias + ReLU and contribute
    0 to fc2, so results match the unpadded math.
    """
    P, K = w1.shape
    Pp = _round_up(P, LANE)

    w1t = jnp.pad(jnp.asarray(w1, jnp.float32).T, ((0, 0), (0, Pp - P)))
    w2t = jnp.pad(jnp.asarray(w2, jnp.float32).T, ((0, Pp - P), (0, 0)))
    b1r = jnp.pad(jnp.asarray(b1, jnp.float32).reshape(1, P),
                  ((0, 0), (0, Pp - P)))
    b2r = jnp.asarray(b2, jnp.float32).reshape(1, P)

    return dict(
        w1t=w1t.astype(compute_dtype),
        b1r=b1r,
        w2t=w2t.astype(compute_dtype),
        b2r=b2r,
    )


def _pick_tile_m(n, tm):
    """Batch tile: large for roofline, balanced across the grid, and >=2 tiles
    for moderate/large N so ('parallel',) can shard across v7x's 2 TCs."""
    n_tiles = max(pl.cdiv(n, tm), 1)
    if n_tiles == 1 and n > 256:
        n_tiles = 2
    tile = min(_round_up(pl.cdiv(n, n_tiles), SUBLANE), _round_up(n, SUBLANE))
    tile = max(tile, SUBLANE)
    return tile, pl.cdiv(n, tile)


@functools.partial(jax.jit, static_argnames=("tm", "out_dtype"))
def hidden_block(x, params, *, tm=1024, out_dtype=jnp.bfloat16):
    """x: [N, K]. Returns [N, P] = relu(relu(x W1^T + b1) W2^T + b2)."""
    w1t, b1r, w2t, b2r = params["w1t"], params["b1r"], params["w2t"], params["b2r"]
    K, Pp = w1t.shape          # static ints (from weight shapes)
    P = w2t.shape[1]
    N = x.shape[0]
    assert x.shape[1] == K, (x.shape, K)

    tile_m, grid_m = _pick_tile_m(N, tm)

    cost = pl.CostEstimate(
        flops=2 * N * (K * Pp + Pp * P),
        transcendentals=0,
        bytes_accessed=(
            N * K * x.dtype.itemsize                    # x stream (read once)
            + N * P * jnp.dtype(out_dtype).itemsize     # lean output stream
            + K * Pp * w1t.dtype.itemsize               # resident weights
            + Pp * P * w2t.dtype.itemsize
            + (Pp + P) * 4                              # biases (f32)
        ),
    )

    return pl.pallas_call(
        hidden_block_kernel,
        out_shape=jax.ShapeDtypeStruct((N, P), out_dtype),
        grid_spec=pltpu.PrefetchScalarGridSpec(
            num_scalar_prefetch=0,
            grid=(grid_m,),
            in_specs=[
                pl.BlockSpec((tile_m, K), lambda i: (i, 0)),  # x tile (K = full dim)
                pl.BlockSpec((K, Pp), lambda i: (0, 0)),      # w1 (resident)
                pl.BlockSpec((1, Pp), lambda i: (0, 0)),      # b1 (resident)
                pl.BlockSpec((Pp, P), lambda i: (0, 0)),      # w2 (resident)
                pl.BlockSpec((1, P), lambda i: (0, 0)),       # b2 (resident)
            ],
            out_specs=pl.BlockSpec((tile_m, P), lambda i: (i, 0)),
        ),
        compiler_params=pltpu.CompilerParams(
            dimension_semantics=("parallel",)),
        cost_estimate=cost,
    )(x, w1t, b1r, w2t, b2r)


def hidden_block_ref(x, w1, b1, w2, b2):
    h = jnp.maximum(x @ w1.T + b1, 0.0)
    return jnp.maximum(h @ w2.T + b2, 0.0)


if __name__ == "__main__":
    # Small shapes consistent with the module: channels=4 -> in = 4*7*7 = 196.
    channels, planes, batch = 4, 32, 8
    in_features = channels * 7 * 7

    key = jax.random.PRNGKey(0)
    kx, kw1, kb1, kw2, kb2 = jax.random.split(key, 5)

    x = jax.random.normal(kx, (batch, in_features), dtype=jnp.float32)
    # Deterministic synthetic parameters (PyTorch Linear weight layout [out, in]).
    w1 = jax.random.normal(kw1, (planes, in_features), jnp.float32) * 0.05
    b1 = jax.random.normal(kb1, (planes,), jnp.float32) * 0.05
    w2 = jax.random.normal(kw2, (planes, planes), jnp.float32) * 0.05
    b2 = jax.random.normal(kb2, (planes,), jnp.float32) * 0.05

    # One-time parameter preparation (hoisted out of the forward path).
    params = prepare_hidden_block_params(w1, b1, w2, b2)

    out = hidden_block(x, params)
    out = jax.block_until_ready(out)

    ref = hidden_block_ref(x, w1, b1, w2, b2)
    assert out.shape == (batch, planes), out.shape
    # bf16 inputs on the MXU + bf16 output -> bf16-level tolerance vs f32 reference.
    assert jnp.allclose(out.astype(jnp.float32), ref, atol=3e-2, rtol=3e-2), (
        float(jnp.max(jnp.abs(out.astype(jnp.float32) - ref))))

    print("KERNEL_OK")
</pallas_src>

<mosaic_0001>
module attributes {stable_mosaic.version = 11 : i64} {
  func.func @hidden_block_kernel(%arg0: i32, %arg1: memref<8x196xf32, #tpu.memory_space<vmem>>, %arg2: memref<196x128xbf16, #tpu.memory_space<vmem>>, %arg3: memref<1x128xf32, #tpu.memory_space<vmem>>, %arg4: memref<128x32xbf16, #tpu.memory_space<vmem>>, %arg5: memref<1x32xf32, #tpu.memory_space<vmem>>, %arg6: memref<8x32xbf16, #tpu.memory_space<vmem>>) attributes {dimension_semantics = [#tpu.dimension_semantics<parallel>], iteration_bounds = array<i64: 1>, scalar_prefetch = 0 : i64, scratch_operands = 0 : i64, tpu.core_type = #tpu.core_type<tc>, window_params = [{transform_indices = @transform_0, window_bounds = array<i64: 8, 196>}, {pipeline_mode = #tpu.pipeline_mode<synchronous>, transform_indices = @transform_1, window_bounds = array<i64: 196, 128>}, {pipeline_mode = #tpu.pipeline_mode<synchronous>, transform_indices = @transform_2, window_bounds = array<i64: 1, 128>}, {pipeline_mode = #tpu.pipeline_mode<synchronous>, transform_indices = @transform_3, window_bounds = array<i64: 128, 32>}, {pipeline_mode = #tpu.pipeline_mode<synchronous>, transform_indices = @transform_4, window_bounds = array<i64: 1, 32>}, {transform_indices = @transform_5, window_bounds = array<i64: 8, 32>}]} {
    %c0 = arith.constant 0 : index
    %c0_0 = arith.constant 0 : index
    %0 = vector.load %arg1[%c0, %c0_0] : memref<8x196xf32, #tpu.memory_space<vmem>>, vector<8x196xf32>
    %1 = arith.truncf %0 : vector<8x196xf32> to vector<8x196xbf16>
    %c0_1 = arith.constant 0 : index
    %c0_2 = arith.constant 0 : index
    %2 = vector.load %arg2[%c0_1, %c0_2] : memref<196x128xbf16, #tpu.memory_space<vmem>>, vector<196x128xbf16>
    %cst = arith.constant dense<0.000000e+00> : vector<8x128xf32>
    %3 = tpu.matmul %1, %2, %cst {dimension_numbers = #tpu.dot_dimension_numbers<[1], [0], [0], [1], [0, 0, 1, 1], [], []>} : vector<8x196xbf16>, vector<196x128xbf16>, vector<8x128xf32> -> vector<8x128xf32>
    %c0_3 = arith.constant 0 : index
    %c0_4 = arith.constant 0 : index
    %4 = vector.load %arg3[%c0_3, %c0_4] : memref<1x128xf32, #tpu.memory_space<vmem>>, vector<1x128xf32>
    %5 = vector.broadcast %4 : vector<1x128xf32> to vector<8x128xf32>
    %6 = arith.addf %3, %5 : vector<8x128xf32>
    %cst_5 = arith.constant 0.000000e+00 : f32
    %7 = vector.broadcast %cst_5 : f32 to vector<8x128xf32>
    %8 = arith.maximumf %6, %7 : vector<8x128xf32>
    %9 = arith.truncf %8 : vector<8x128xf32> to vector<8x128xbf16>
    %c0_6 = arith.constant 0 : index
    %c0_7 = arith.constant 0 : index
    %10 = vector.load %arg4[%c0_6, %c0_7] : memref<128x32xbf16, #tpu.memory_space<vmem>>, vector<128x32xbf16>
    %cst_8 = arith.constant dense<0.000000e+00> : vector<8x32xf32>
    %11 = tpu.matmul %9, %10, %cst_8 {dimension_numbers = #tpu.dot_dimension_numbers<[1], [0], [0], [1], [0, 0, 1, 1], [], []>} : vector<8x128xbf16>, vector<128x32xbf16>, vector<8x32xf32> -> vector<8x32xf32>
    %c0_9 = arith.constant 0 : index
    %c0_10 = arith.constant 0 : index
    %12 = vector.load %arg5[%c0_9, %c0_10] : memref<1x32xf32, #tpu.memory_space<vmem>>, vector<1x32xf32>
    %13 = vector.broadcast %12 : vector<1x32xf32> to vector<8x32xf32>
    %14 = arith.addf %11, %13 : vector<8x32xf32>
    %cst_11 = arith.constant 0.000000e+00 : f32
    %15 = vector.broadcast %cst_11 : f32 to vector<8x32xf32>
    %16 = arith.maximumf %14, %15 : vector<8x32xf32>
    %17 = arith.truncf %16 : vector<8x32xf32> to vector<8x32xbf16>
    %c0_12 = arith.constant 0 : index
    %c0_13 = arith.constant 0 : index
    %18 = vector.load %arg6[%c0_12, %c0_13] : memref<8x32xbf16, #tpu.memory_space<vmem>>, vector<8x32xbf16>
    tpu.vector_store %arg6[%c0_12, %c0_13], %17 {strides = array<i32>} : memref<8x32xbf16, #tpu.memory_space<vmem>>, vector<8x32xbf16>,
    return
  }
  func.func @transform_0(%arg0: i32) -> (i32, i32) {
    %c0_i32 = arith.constant 0 : i32
    %c0_i32_0 = arith.constant 0 : i32
    return %arg0, %c0_i32 : i32, i32
  }
  func.func @transform_1(%arg0: i32) -> (i32, i32) {
    %c0_i32 = arith.constant 0 : i32
    %c0_i32_0 = arith.constant 0 : i32
    %c0_i32_1 = arith.constant 0 : i32
    return %c0_i32, %c0_i32_0 : i32, i32
  }
  func.func @transform_2(%arg0: i32) -> (i32, i32) {
    %c0_i32 = arith.constant 0 : i32
    %c0_i32_0 = arith.constant 0 : i32
    %c0_i32_1 = arith.constant 0 : i32
    return %c0_i32, %c0_i32_0 : i32, i32
  }
  func.func @transform_3(%arg0: i32) -> (i32, i32) {
    %c0_i32 = arith.constant 0 : i32
    %c0_i32_0 = arith.constant 0 : i32
    %c0_i32_1 = arith.constant 0 : i32
    return %c0_i32, %c0_i32_0 : i32, i32
  }
  func.func @transform_4(%arg0: i32) -> (i32, i32) {
    %c0_i32 = arith.constant 0 : i32
    %c0_i32_0 = arith.constant 0 : i32
    %c0_i32_1 = arith.constant 0 : i32
    return %c0_i32, %c0_i32_0 : i32, i32
  }
  func.func @transform_5(%arg0: i32) -> (i32, i32) {
    %c0_i32 = arith.constant 0 : i32
    %c0_i32_0 = arith.constant 0 : i32
    return %arg0, %c0_i32 : i32, i32
  }
}

</mosaic_0001>

<bundles_post_ra>
// kernel: hidden_block.1
= control target key start
LH: loop header
LB: loop body
LE: loop exit
PB: predicated region body
PF: predicated region fallthrough
CT: control target
= control target key end

     0   :  { %10 = vsyncpa [#allocation3], 0  ;;  %s553_s0 = inlined_call_operand.vmem [shape: f32[8,196], index: 0, kind: input, shape index: {}]   ;;  %s554_s1 = inlined_call_operand.hbm [shape: bf16[196,128], index: 1, kind: input, shape index: {}]   ;;  %s555_s2 = inlined_call_operand.vmem [shape: f32[1,128], index: 2, kind: input, shape index: {}]   ;;  %s556_s3 = inlined_call_operand.vmem [shape: bf16[128,32], index: 3, kind: input, shape index: {}]   ;;  %s557_s4 = inlined_call_operand.vmem [shape: f32[1,32], index: 4, kind: input, shape index: {}]   ;;  %s558_s5 = inlined_call_operand.hbm [shape: bf16[8,32], index: 5, kind: output, shape index: {}]  }
   0x1   :  { %11 = vsyncpa [#allocation4], 0  ;;  %s452_s18 = smov [#allocation2]  }
   0x2   :  { %s19_s19 = sshll.u32 %s452_s18, 4  ;;  %s20_s19 = int_to_ptr.vmem [resolvable:$true] %s19_s19 }
   0x3   :  { %s416_s20 = scalar_lea.vmem %s20_s19, 1600  ;;  %p421_p1 = scmp.lt.s32.totalorder %s20_s19, %s20_s19 }
   0x4   :  { %p417_p0 = scmp.ne.s32.totalorder %s20_s19, %s416_s20  ;;  %p422_p2 = scmp.lt.s32.totalorder %s416_s20, %s416_s20 }
   0x6   :  { %p423_p3 = por %p422_p2, %p421_p1 }
   0x8   :  { %p424_p4 = pnand %p423_p3, %p417_p0 }
   0xa   :  { %427 = shalt.err (!%p424_p4)
}
   0xb   :  { %s453_s21 = smov 64   ;;  %s454_s22 = smov 4  }
   0xc   :  { %25 = dma.hbm_to_vmem [thread:$0]  %s554_s1, 1600, %s20_s19, [#allocation3], %s453_s21, %s453_s21, %s454_s22  }
   0xd   :  { %448 = dma.done.wait [#allocation3], 1600  }
   0xe   :  { %449 = vsyncadd [#allocation3], 4294965696  ;;  %v455_v0 = vmov 0   ;;  %v456_v1 = vmov 0.0   ;;  %v387_v2 = vld [vmem:[#allocation2 + $0x38] sm:$0xff]   ;;  %v388_v3 = vld [vmem:[#allocation2 + $0x30] sm:$0xff]  }
   0xf   :  { %155 = vmatprep.subr.bf16.mxu0 %v455_v0  ;;  %360 = vmatprep.subr.bf16.mxu1 %v456_v1  ;;  %v389_v4 = vld [vmem:[#allocation2 + $0x28] sm:$0xff]   ;;  %v390_v5 = vld [vmem:[#allocation2 + $0x20] sm:$0xff]   ;;  %vm147_vm0 = vcmask 556032   ;;  %v391_v7 = vld [vmem:[#allocation2 + $0x18] sm:$0xff]   ;;  %vm151_vm1 = vcmask 1041408   ;;  %vm457_vm2 = vmmov 0  }
  0x10   :  { %156 = vmatpush1.bf16.msra.mxu0 %v387_v2  ;;  %v37_v6 = vld [vmem:[%s553_s0 + $0x8] sm:$0xff]  ;;  %v400_v9 = vld [vmem:[%s556_s3 + $0x38] sm:$0xff]   ;;  %v401_v10 = vld [vmem:[%s556_s3 + $0x30] sm:$0xff]   ;;  %376 = vmatprep.mubr.msk.bf16.mxu1 %vm457_vm2, %v456_v1  ;;  %vm310_vm3 = vcmask 257024  }
  0x11   :  { %157 = vmatprep.subr.bf16.mxu0 %v455_v0  ;;  %v39_v8 = vpack.c.bf16 %v37_v6, %v37_v6  ;;  %361 = vmatpush3.bf16.msra.mxu1 %v400_v9  ;;  %v392_v11 = vld [vmem:[#allocation2 + $0x10] sm:$0xff]   ;;  %v402_v12 = vld [vmem:[%s556_s3 + $0x28] sm:$0xff]   ;;  %v403_v14 = vld [vmem:[%s556_s3 + $0x20] sm:$0xff]  }
  0x12   :  { %362 = vmatprep.subr.bf16.mxu1 %v456_v1  ;;  %v393_v13 = vld [vmem:[#allocation2 + $0x8] sm:$0xff]   ;;  %v394_v15 = vld [vmem:[#allocation2] sm:$0xff]   ;;  %v404_v17 = vld [vmem:[%s556_s3 + $0x18] sm:$0xff]  }
  0x13   :  { %341 = vmatprep.mubr.msk.bf16.mxu0 %vm147_vm0, %v39_v8  ;;  %v395_v16 = vld [vmem:[#allocation2 + $0x60] ss:$0 sps:$4 sm:$0x33]   ;;  %v405_v19 = vld [vmem:[%s556_s3 + $0x10] sm:$0xff]   ;;  %v396_v20 = vld [vmem:[#allocation2 + $0x58] sm:$0xff]  }
  0x14   :  { %158 = vmatpush1.bf16.msra.mxu0 %v388_v3  ;;  %v153_v18 = vsel %vm151_vm1, %v395_v16, 0  ;;  %v397_v21 = vld [vmem:[#allocation2 + $0x50] sm:$0xff]   ;;  %v398_v22 = vld [vmem:[#allocation2 + $0x48] sm:$0xff]   ;;  %v399_v23 = vld [vmem:[#allocation2 + $0x40] sm:$0xff]  }
  0x15   :  { %159 = vmatprep.subr.bf16.mxu0 %v455_v0  ;;  %363 = vmatpush3.bf16.msra.mxu1 %v401_v10  ;;  %v36_v24 = vld [vmem:[%s553_s0] sm:$0xff]  ;;  %v406_v26 = vld [vmem:[%s556_s3 + $0x8] sm:$0xff]  }
  0x16   :  { %364 = vmatprep.subr.bf16.mxu1 %v456_v1  ;;  %v38_v25 = vpack.c.bf16 %v36_v24, %v36_v24  ;;  %v407_v27 = vld [vmem:[%s556_s3] sm:$0xff]   ;;  %s458_s3 = smov [#allocation5]  }
  0x17   :  { %v327_v28 = vld [vmem:[%s555_s2] ss:$0 sm:$0xff]  ;;  %s318_s22 = sshll.u32 %s458_s3, 4  ;;  %s319_s22 = int_to_ptr.vmem [resolvable:$true] %s318_s22 }
  0x18   :  { %160 = vmatpush1.bf16.msra.mxu0 %v389_v4  ;;  %v342_v36 = vld [vmem:[%s557_s4] ss:$0 sm:$0xff]  ;;  %s428_s2 = scalar_lea.vmem %s319_s22, 64  ;;  %p433_p6 = scmp.lt.s32.totalorder %s319_s22, %s319_s22 }
  0x19   :  { %161 = vmatprep.subr.bf16.mxu0 %v455_v0  ;;  %365 = vmatpush3.bf16.msra.mxu1 %v402_v12  ;;  %p429_p5 = scmp.ne.s32.totalorder %s319_s22, %s428_s2  ;;  %p434_p7 = scmp.lt.s32.totalorder %s428_s2, %s428_s2 }
  0x1a   :  { %366 = vmatprep.subr.bf16.mxu1 %v456_v1 }
  0x1b   :  { %p435_p8 = por %p434_p7, %p433_p6 }
  0x1c   :  { %162 = vmatpush1.bf16.msra.mxu0 %v390_v5 }
  0x1d   :  { %163 = vmatprep.subr.bf16.mxu0 %v455_v0  ;;  %367 = vmatpush3.bf16.msra.mxu1 %v403_v14  ;;  %p436_p9 = pnand %p435_p8, %p429_p5 }
  0x1e   :  { %368 = vmatprep.subr.bf16.mxu1 %v456_v1 }
  0x20   :  { %164 = vmatpush1.bf16.msra.mxu0 %v391_v7 }
  0x21   :  { %165 = vmatprep.subr.bf16.mxu0 %v455_v0  ;;  %369 = vmatpush3.bf16.msra.mxu1 %v404_v17 }
  0x22   :  { %370 = vmatprep.subr.bf16.mxu1 %v456_v1 }
  0x24   :  { %166 = vmatpush1.bf16.msra.mxu0 %v392_v11 }
  0x25   :  { %167 = vmatprep.subr.bf16.mxu0 %v455_v0  ;;  %371 = vmatpush3.bf16.msra.mxu1 %v405_v19 }
  0x26   :  { %372 = vmatprep.subr.bf16.mxu1 %v456_v1 }
  0x28   :  { %168 = vmatpush1.bf16.msra.mxu0 %v393_v13 }
  0x29   :  { %169 = vmatprep.subr.bf16.mxu0 %v455_v0  ;;  %373 = vmatpush3.bf16.msra.mxu1 %v406_v26 }
  0x2a   :  { %374 = vmatprep.subr.bf16.mxu1 %v456_v1 }
  0x2c   :  { %170 = vmatpush1.bf16.msra.mxu0 %v394_v15 }
  0x2d   :  { %177 = vmatprep.subr.bf16.mxu0 %v455_v0  ;;  %375 = vmatpush3.bf16.msra.mxu1 %v407_v27 }
  0x30   :  { %178 = vmatpush2.bf16.msra.mxu0 %v153_v18 }
  0x31   :  { %179 = vmatprep.subr.bf16.mxu0 %v455_v0 }
  0x34   :  { %180 = vmatpush2.bf16.msra.mxu0 %v396_v20 }
  0x35   :  { %181 = vmatprep.subr.bf16.mxu0 %v455_v0 }
  0x38   :  { %182 = vmatpush2.bf16.msra.mxu0 %v397_v21 }
  0x39   :  { %183 = vmatprep.subr.bf16.mxu0 %v455_v0 }
  0x3c   :  { %184 = vmatpush2.bf16.msra.mxu0 %v398_v22 }
  0x3d   :  { %185 = vmatprep.subr.bf16.mxu0 %v455_v0 }
  0x40   :  { %186 = vmatpush2.bf16.msra.mxu0 %v399_v23 }
  0x43   :  { %188 = vmatmul.mubr.bf16.vlgmr.msra.gmra.mxu0 %v38_v25 }
 0x103   :  { %v189_v29 = vpop.f32.mrf.mxu0 }
 0x104   :  { %v190_v30 = vadd.f32 %v327_v28, %v189_v29 }
 0x105   :  { %v191_v31 = vpop.f32.mrf.mxu0 }
 0x106   :  { %v195_v32 = vmax.f32 %v190_v30, 0.0 }
 0x107   :  { %v192_v33 = vpop.f32.mrf.mxu0 }
 0x108   :  { %v196_v34 = vpack.c.bf16 %v195_v32, %v195_v32 }
 0x109   :  { %v193_v35 = vpop.f32.mrf.mxu0 }
 0x10a   :  { %377 = vmatmul.mubr.bf16.vlgmr.msra.gmra.mxu1 %v196_v34 }
 0x1ca   :  { %v302_v37 = vpop.f32.mrf.mxu1 }
 0x1cb   :  { %v303_v38 = vadd.f32 %v342_v36, %v302_v37 }
 0x1cc   :  { %v378_v39 = vpop.f32.mrf.mxu1 }
 0x1cd   :  { %v308_v40 = vmax.f32 %v303_v38, 0.0 }
 0x1ce   :  { %v305_v41 = vpop.f32.mrf.mxu1 }
 0x1cf   :  { %v309_v42 = vpack.c.bf16 %v308_v40, %v308_v40 }
 0x1d0   :  { %v379_v43 = vpop.f32.mrf.mxu1 }
 0x1d1   :  { %311 = vst.msk [vmem:[#allocation5] sm:$0xf] %vm310_vm3, %v309_v42 }
 0x1d2   :  { %439 = shalt.err (!%p436_p9)
}
 0x1d3   :  { %321 = dma.vmem_to_hbm [thread:$0]  %s319_s22, 64, %s558_s5, [#allocation4]  }
 0x1d4   :  { %450 = dma.done.wait [#allocation4], 64  }
 0x1d5   :  { %451 = vsyncadd [#allocation4], 4294967232 }
 0x1d6   :  { %325 = vsyncpa [#allocation3], 1 }
 0x1d7   :  { %326 = vsyncpa [#allocation4], 1 }

</bundles_post_ra>
